<compile_context>
chip_gen: v7x
topology: tpu7x:2x2x1
jax: 0.10.0
libtpu: 0.0.40
codegen_flags: <defaults>
</compile_context>

<pallas_src>
import jax
import jax.numpy as jnp
from jax.experimental import pallas as pl
from jax.experimental.pallas import tpu as pltpu

LANE = 128


def _round_up(x, m):
    return (x + m - 1) // m * m


def mlp_kernel(x_ref, w1_ref, b1_ref, w2_ref, b2_ref, o_ref):
    # fc1 (bf16 MXU, f32 accumulate) + bias + sigmoid (single EUP tanh).
    h = jnp.dot(x_ref[...], w1_ref[...], preferred_element_type=jnp.float32)
    h = h + b1_ref[...]                              # (1, Hp) broadcast over rows, f32
    h = 0.5 * jnp.tanh(0.5 * h) + 0.5                # sigmoid(h), exact up to tanh ulp
    # Padded hidden columns are sigmoid(0)=0.5, but the matching w2 rows are zero, so
    # they contribute nothing to fc2.
    logits = jnp.dot(h.astype(w2_ref.dtype), w2_ref[...],
                     preferred_element_type=jnp.float32)
    logits = logits + b2_ref[...]                    # padded logit cols get -1e30 bias
    m = jnp.max(logits, axis=-1, keepdims=True)
    e = jnp.exp(logits - m)                          # padded cols underflow to exactly 0
    denom = jnp.sum(e, axis=-1, keepdims=True)
    o_ref[...] = (e * (1.0 / denom)).astype(o_ref.dtype)   # exact recip of (tile_b,1) col


def prepare_params(w1, b1, w2, b2):
    """One-time padding + bf16 cast of the weights (hoisted out of the hot path)."""
    D_in, H = w1.shape
    D_out = w2.shape[1]
    Hp = _round_up(H, LANE)
    Op = _round_up(D_out, LANE)
    w1p = jnp.zeros((D_in, Hp), jnp.bfloat16).at[:, :H].set(w1.astype(jnp.bfloat16))
    b1p = jnp.zeros((1, Hp), jnp.float32).at[:, :H].set(b1)
    w2p = jnp.zeros((Hp, Op), jnp.bfloat16).at[:H, :D_out].set(w2.astype(jnp.bfloat16))
    # -1e30 bias on padded logit columns -> exp underflows to 0 -> excluded from softmax.
    b2p = jnp.full((1, Op), -1e30, jnp.float32).at[:, :D_out].set(b2)
    return w1p, b1p, w2p, b2p


def _pick_tile_b(B):
    # Grow the batch tile (less per-step overhead) but keep >= 2 grid steps when the
    # batch allows, so v7x's two TensorCores both get a share of the "parallel" axis.
    tile_b = 128
    while tile_b * 4 <= B and tile_b < 512:
        tile_b *= 2
    return tile_b


def net_forward(x, w1p, b1p, w2p, b2p, *, tile_b=None):
    """Returns the lane-padded (Bp, 128) softmax output; real data is [:B, :D_out]."""
    B, D_in = x.shape
    Hp = w1p.shape[1]
    Op = w2p.shape[1]

    if tile_b is None:
        tile_b = _pick_tile_b(B)
    Bp = _round_up(B, tile_b)

    xb = x.astype(jnp.bfloat16)
    if Bp != B:
        xb = jnp.zeros((Bp, D_in), jnp.bfloat16).at[:B].set(xb)

    grid = (Bp // tile_b,)

    # Advisory cost from the TRUE dims (H=Hp real part etc. is close enough; avoid the
    # old 4-8x inflation from padded D_in).
    H_true, O_true = Hp, Op  # upper bounds; refine with real dims below
    flops = 2 * B * (D_in * H_true + H_true * O_true)
    transcendentals = B * (H_true + O_true)           # tanh per hidden + exp per logit
    bytes_accessed = (2 * B * D_in + 2 * (D_in * Hp + Hp * Op)
                      + 4 * (Hp + Op) + 4 * B * Op)

    return pl.pallas_call(
        mlp_kernel,
        out_shape=jax.ShapeDtypeStruct((Bp, Op), jnp.float32),
        grid=grid,
        in_specs=[
            pl.BlockSpec((tile_b, D_in), lambda i: (i, 0)),  # x: tiled over batch, K unpadded
            pl.BlockSpec((D_in, Hp), lambda i: (0, 0)),      # w1: resident in VMEM
            pl.BlockSpec((1, Hp), lambda i: (0, 0)),         # b1: resident
            pl.BlockSpec((Hp, Op), lambda i: (0, 0)),        # w2: resident
            pl.BlockSpec((1, Op), lambda i: (0, 0)),         # b2: resident
        ],
        out_specs=pl.BlockSpec((tile_b, Op), lambda i: (i, 0)),  # lane-dense 128-wide store
        compiler_params=pltpu.CompilerParams(
            dimension_semantics=("parallel",),
        ),
        cost_estimate=pl.CostEstimate(
            flops=flops,
            transcendentals=transcendentals,
            bytes_accessed=bytes_accessed,
        ),
    )(xb, w1p, b1p, w2p, b2p)


def init_params(key, D_in, H, D_out):
    # Deterministic init mimicking nn.Linear's U(-1/sqrt(fan_in), 1/sqrt(fan_in)).
    k1, k2, k3, k4 = jax.random.split(key, 4)
    bound1 = 1.0 / jnp.sqrt(D_in)
    bound2 = 1.0 / jnp.sqrt(H)
    w1 = jax.random.uniform(k1, (D_in, H), jnp.float32, -bound1, bound1)
    b1 = jax.random.uniform(k2, (1, H), jnp.float32, -bound1, bound1)
    w2 = jax.random.uniform(k3, (H, D_out), jnp.float32, -bound2, bound2)
    b2 = jax.random.uniform(k4, (1, D_out), jnp.float32, -bound2, bound2)
    return w1, b1, w2, b2


if __name__ == "__main__":
    # Module shapes: D_in=32, H=64, D_out=16; batch of 256 so the grid (tile_b=128)
    # actually has two steps (and can shard across v7x's two TensorCores).
    B, D_in, H, D_out = 256, 32, 64, 16
    key = jax.random.PRNGKey(0)
    kx, kp = jax.random.split(key)
    x = jax.random.normal(kx, (B, D_in), jnp.float32)
    w1, b1, w2, b2 = init_params(kp, D_in, H, D_out)

    # One-time (init-time) padding + bf16 cast of the weights.
    w1p, b1p, w2p, b2p = prepare_params(w1, b1, w2, b2)

    fwd = jax.jit(net_forward)
    out_padded = jax.block_until_ready(fwd(x, w1p, b1p, w2p, b2p))
    out = out_padded[:B, :D_out]   # consumer-side slice; padded array is also usable directly

    # Reference in pure f32 JAX. Tolerance covers the bf16 MXU inputs (weights/x/hidden).
    ref = jax.nn.softmax(jax.nn.sigmoid(x @ w1 + b1) @ w2 + b2, axis=1)
    assert out.shape == (B, D_out)
    assert jnp.allclose(out, ref, atol=1e-2), "mismatch vs reference"
    assert jnp.allclose(out.sum(axis=1), 1.0, atol=1e-5), "softmax rows must sum to 1"
    print("KERNEL_OK")
</pallas_src>

<mosaic_0001>
module attributes {stable_mosaic.version = 11 : i64} {
  func.func @mlp_kernel(%arg0: i32, %arg1: memref<128x32xbf16, #tpu.memory_space<vmem>>, %arg2: memref<32x128xbf16, #tpu.memory_space<vmem>>, %arg3: memref<1x128xf32, #tpu.memory_space<vmem>>, %arg4: memref<128x128xbf16, #tpu.memory_space<vmem>>, %arg5: memref<1x128xf32, #tpu.memory_space<vmem>>, %arg6: memref<128x128xf32, #tpu.memory_space<vmem>>) attributes {dimension_semantics = [#tpu.dimension_semantics<parallel>], iteration_bounds = array<i64: 2>, scalar_prefetch = 0 : i64, scratch_operands = 0 : i64, tpu.core_type = #tpu.core_type<tc>, window_params = [{transform_indices = @transform_0, window_bounds = array<i64: 128, 32>}, {pipeline_mode = #tpu.pipeline_mode<synchronous>, transform_indices = @transform_1, window_bounds = array<i64: 32, 128>}, {pipeline_mode = #tpu.pipeline_mode<synchronous>, transform_indices = @transform_2, window_bounds = array<i64: 1, 128>}, {pipeline_mode = #tpu.pipeline_mode<synchronous>, transform_indices = @transform_3, window_bounds = array<i64: 128, 128>}, {pipeline_mode = #tpu.pipeline_mode<synchronous>, transform_indices = @transform_4, window_bounds = array<i64: 1, 128>}, {transform_indices = @transform_5, window_bounds = array<i64: 128, 128>}]} {
    %c0 = arith.constant 0 : index
    %c0_0 = arith.constant 0 : index
    %0 = vector.load %arg1[%c0, %c0_0] : memref<128x32xbf16, #tpu.memory_space<vmem>>, vector<128x32xbf16>
    %c0_1 = arith.constant 0 : index
    %c0_2 = arith.constant 0 : index
    %1 = vector.load %arg2[%c0_1, %c0_2] : memref<32x128xbf16, #tpu.memory_space<vmem>>, vector<32x128xbf16>
    %cst = arith.constant dense<0.000000e+00> : vector<128x128xf32>
    %2 = tpu.matmul %0, %1, %cst {dimension_numbers = #tpu.dot_dimension_numbers<[1], [0], [0], [1], [0, 0, 1, 1], [], []>} : vector<128x32xbf16>, vector<32x128xbf16>, vector<128x128xf32> -> vector<128x128xf32>
    %c0_3 = arith.constant 0 : index
    %c0_4 = arith.constant 0 : index
    %3 = vector.load %arg3[%c0_3, %c0_4] : memref<1x128xf32, #tpu.memory_space<vmem>>, vector<1x128xf32>
    %4 = vector.broadcast %3 : vector<1x128xf32> to vector<128x128xf32>
    %5 = arith.addf %2, %4 : vector<128x128xf32>
    %cst_5 = arith.constant 5.000000e-01 : f32
    %6 = vector.broadcast %cst_5 : f32 to vector<128x128xf32>
    %7 = arith.mulf %6, %5 : vector<128x128xf32>
    %8 = math.tanh %7 : vector<128x128xf32>
    %cst_6 = arith.constant 5.000000e-01 : f32
    %9 = vector.broadcast %cst_6 : f32 to vector<128x128xf32>
    %10 = arith.mulf %9, %8 : vector<128x128xf32>
    %cst_7 = arith.constant 5.000000e-01 : f32
    %11 = vector.broadcast %cst_7 : f32 to vector<128x128xf32>
    %12 = arith.addf %10, %11 : vector<128x128xf32>
    %13 = arith.truncf %12 : vector<128x128xf32> to vector<128x128xbf16>
    %c0_8 = arith.constant 0 : index
    %c0_9 = arith.constant 0 : index
    %14 = vector.load %arg4[%c0_8, %c0_9] : memref<128x128xbf16, #tpu.memory_space<vmem>>, vector<128x128xbf16>
    %cst_10 = arith.constant dense<0.000000e+00> : vector<128x128xf32>
    %15 = tpu.matmul %13, %14, %cst_10 {dimension_numbers = #tpu.dot_dimension_numbers<[1], [0], [0], [1], [0, 0, 1, 1], [], []>} : vector<128x128xbf16>, vector<128x128xbf16>, vector<128x128xf32> -> vector<128x128xf32>
    %c0_11 = arith.constant 0 : index
    %c0_12 = arith.constant 0 : index
    %16 = vector.load %arg5[%c0_11, %c0_12] : memref<1x128xf32, #tpu.memory_space<vmem>>, vector<1x128xf32>
    %17 = vector.broadcast %16 : vector<1x128xf32> to vector<128x128xf32>
    %18 = arith.addf %15, %17 : vector<128x128xf32>
    %cst_13 = arith.constant dense<0xFF800000> : vector<128xf32>
    %19 = vector.multi_reduction <maximumf>, %18, %cst_13 [1] : vector<128x128xf32> to vector<128xf32>
    %20 = vector.shape_cast %19 : vector<128xf32> to vector<128x1xf32>
    %21 = vector.broadcast %20 : vector<128x1xf32> to vector<128x128xf32>
    %22 = arith.subf %18, %21 : vector<128x128xf32>
    %23 = math.exp %22 : vector<128x128xf32>
    %cst_14 = arith.constant dense<0.000000e+00> : vector<128xf32>
    %24 = vector.multi_reduction <add>, %23, %cst_14 [1] : vector<128x128xf32> to vector<128xf32>
    %25 = vector.shape_cast %24 : vector<128xf32> to vector<128x1xf32>
    %cst_15 = arith.constant 1.000000e+00 : f32
    %26 = vector.broadcast %cst_15 : f32 to vector<128x1xf32>
    %27 = arith.divf %26, %25 : vector<128x1xf32>
    %28 = vector.broadcast %27 : vector<128x1xf32> to vector<128x128xf32>
    %29 = arith.mulf %23, %28 : vector<128x128xf32>
    %c0_16 = arith.constant 0 : index
    %c0_17 = arith.constant 0 : index
    %30 = vector.load %arg6[%c0_16, %c0_17] : memref<128x128xf32, #tpu.memory_space<vmem>>, vector<128x128xf32>
    tpu.vector_store %arg6[%c0_16, %c0_17], %29 {strides = array<i32>} : memref<128x128xf32, #tpu.memory_space<vmem>>, vector<128x128xf32>,
    return
  }
  func.func @transform_0(%arg0: i32) -> (i32, i32) {
    %c0_i32 = arith.constant 0 : i32
    %c0_i32_0 = arith.constant 0 : i32
    return %arg0, %c0_i32 : i32, i32
  }
  func.func @transform_1(%arg0: i32) -> (i32, i32) {
    %c0_i32 = arith.constant 0 : i32
    %c0_i32_0 = arith.constant 0 : i32
    %c0_i32_1 = arith.constant 0 : i32
    return %c0_i32, %c0_i32_0 : i32, i32
  }
  func.func @transform_2(%arg0: i32) -> (i32, i32) {
    %c0_i32 = arith.constant 0 : i32
    %c0_i32_0 = arith.constant 0 : i32
    %c0_i32_1 = arith.constant 0 : i32
    return %c0_i32, %c0_i32_0 : i32, i32
  }
  func.func @transform_3(%arg0: i32) -> (i32, i32) {
    %c0_i32 = arith.constant 0 : i32
    %c0_i32_0 = arith.constant 0 : i32
    %c0_i32_1 = arith.constant 0 : i32
    return %c0_i32, %c0_i32_0 : i32, i32
  }
  func.func @transform_4(%arg0: i32) -> (i32, i32) {
    %c0_i32 = arith.constant 0 : i32
    %c0_i32_0 = arith.constant 0 : i32
    %c0_i32_1 = arith.constant 0 : i32
    return %c0_i32, %c0_i32_0 : i32, i32
  }
  func.func @transform_5(%arg0: i32) -> (i32, i32) {
    %c0_i32 = arith.constant 0 : i32
    %c0_i32_0 = arith.constant 0 : i32
    return %arg0, %c0_i32 : i32, i32
  }
}

</mosaic_0001>

<bundles_post_ra>
// kernel: net_forward.1
= control target key start
LH: loop header
LB: loop body
LE: loop exit
PB: predicated region body
PF: predicated region fallthrough
CT: control target
= control target key end

     0   :  { %10 = vsyncpa [#allocation3], 0  ;;  %s1590_s0 = inlined_call_operand.vmem [shape: bf16[256,32], index: 0, kind: input, shape index: {}]   ;;  %s1591_s1 = inlined_call_operand.vmem [shape: bf16[32,128], index: 1, kind: input, shape index: {}]   ;;  %s1592_s2 = inlined_call_operand.vmem [shape: f32[1,128], index: 2, kind: input, shape index: {}]   ;;  %s1593_s3 = inlined_call_operand.vmem [shape: bf16[128,128], index: 3, kind: input, shape index: {}]   ;;  %s1594_s4 = inlined_call_operand.vmem [shape: f32[1,128], index: 4, kind: input, shape index: {}]   ;;  %s1595_s5 = inlined_call_operand.hbm [shape: f32[256,128], index: 5, kind: output, shape index: {}]  }
   0x1   :  { %12 = vsyncpa [#allocation3 + $0x1], 0  ;;  %s1307_s18 = smov 0   ;;  %s1309_s19 = smov 0  }
   0x2   :  { %s1311_s20 = smov 0   ;;  %s1313_s21 = smov 0  }
   0x3 LB: > { %s1328_s22 = sadd.s32 4294967295, %s1272_s21   ;;  %s920_s23 = sadd.s32 4294967294, %s1272_s21   ;;  %s1272_s21 = sphi %s1313_s21, %s1601_s21   ;;  %s1268_s20 = sphi %s1311_s20, %s1600_s20   ;;  %s1264_s19 = sphi %s1309_s19, %s1599_s19   ;;  %s1260_s18 = sphi %s1307_s18, %s1598_s18  }
   0x4   : > { %s1332_s24 = sadd.s32 1, %s1272_s21   ;;  %s135_s25 = sadd.s32 1, %s1268_s20 }
   0x5   : > { %s132_s26 = ssub.s32 %s1272_s21, %s1332_s24  ;;  %p145_p0 = scmp.ne.s32.totalorder %s1268_s20, %s1264_s19 }
   0x6   : > { %p133_p1 = scmp.eq.s32.totalorder %s132_s26, 0  ;;  %p146_p2 = scmp.eq.s32.totalorder %s1328_s22, 1 }
   0x7   : > { %p151_p3 = scmp.ne.s32.totalorder %s1264_s19, %s1260_s18  ;;  %p152_p4 = scmp.eq.s32.totalorder %s920_s23, 1 }
   0x8   : > { %s1343_s27 = scalar_select %p133_p1, %s1268_s20, %s135_s25  }
   0x9   : > { %p1345_p5 = por %p146_p2, %p145_p0  ;;  %p1349_p6 = por %p152_p4, %p151_p3 }
   0xa   : > { %p923_p7 = scmp.ge.s32.totalorder %s1272_s21, 1  ;;  %p191_p8 = scmp.lt.s32.totalorder %s1272_s21, 3 }
   0xc   : > { %p192_p9 = pnand %p923_p7, %p191_p8 }
   0xd   : > { %v1096_v0 = vld [vmem:[%s1591_s1] sm:$0xff] (!%p192_p9)   ;;  %s925_s7 = sshll.u32 (!%p192_p9), %s1328_s22, 4  ;;  %v1097_v1 = vld [vmem:[%s1591_s1 + $0x8] sm:$0xff] (!%p192_p9)   ;;  %vm306_vm0 = vcmask (!%p192_p9), 261120   ;;  %v1108_v12 = vld [vmem:[%s1593_s3 + $0x10] sm:$0xff] (!%p192_p9)   ;;  %s216_s23 = sand.u32 (!%p192_p9), 1, %s1264_s19  }
   0xe   : > { %195 = sbr.rel (%p192_p9) target bundleno = 836 (0x344), region = 40  ;;  %p220_p10 = scmp.lt.s32.totalorder (!%p192_p9), %s925_s7, 31  ;;  %987 = vmatprep.subr.bf16.mxu0 (!%p192_p9), %v1096_v0  ;;  %v1106_v2 = vld [vmem:[%s1593_s3] sm:$0xff] (!%p192_p9)   ;;  %v1107_v3 = vld [vmem:[%s1593_s3 + $0x8] sm:$0xff] (!%p192_p9)   ;;  %v1109_v13 = vld [vmem:[%s1593_s3 + $0x18] sm:$0xff] (!%p192_p9)  }
   0xf   : > { %988 = vmatpush3.bf16.msra.mxu0 (!%p192_p9), %v1096_v0  ;;  %1039 = vmatprep.subr.bf16.mxu1 (!%p192_p9), %v1106_v2  ;;  %v1110_v14 = vld [vmem:[%s1593_s3 + $0x20] sm:$0xff] (!%p192_p9)   ;;  %v1111_v15 = vld [vmem:[%s1593_s3 + $0x28] sm:$0xff] (!%p192_p9)   ;;  %v1112_v16 = vld [vmem:[%s1593_s3 + $0x30] sm:$0xff] (!%p192_p9)   ;;  %s924_s25 = sshll.u32 (!%p192_p9), %s216_s23, 7  ;;  %s960_s30 = sshll.u32 (!%p192_p9), %s1328_s22, 11 }
  0x10   : > { %989 = vmatprep.subr.bf16.mxu0 (!%p192_p9), %v1097_v1  ;;  %1047 = vmatpush3.bf16.msra.mxu1 (!%p192_p9), %v1106_v2  ;;  %v1113_v17 = vld [vmem:[%s1593_s3 + $0x38] sm:$0xff] (!%p192_p9)   ;;  %v1400_v18 = vld [vmem:[%s1592_s2] ss:$0 sm:$0xff] (!%p192_p9)  ;;  %s1505_s26 = scalar_lea.vmem (!%p192_p9), [#allocation2], %s924_s25  ;;  %s1541_s9 = scalar_lea.hbm (!%p192_p9), %s1595_s5, %s960_s30 }
  0x11   : > { %1040 = vmatprep.subr.bf16.mxu1 (!%p192_p9), %v1107_v3  ;;  %s858_s6 = sshll.u32 (!%p192_p9), %s1505_s26, 4  ;;  %s1549_s22 = scalar_lea.sflag (!%p192_p9), [#allocation3], %s216_s23  ;;  %s1543_s6 = int_to_ptr.vmem [resolvable:$true] %s858_s6 }
  0x12   : > { %s1210_s10 = scalar_lea.vmem (!%p192_p9), %s1543_s6, 2048  ;;  %s1274_s11 = smov (!%p192_p9), [#allocation2]  }
  0x13   : > { %990 = vmatpush3.bf16.msra.mxu0 (!%p192_p9), %v1097_v1  ;;  %p1211_p11 = scmp.ne.s32.totalorder (!%p192_p9), %s1543_s6, %s1210_s10  ;;  %s1214_s12 = sshll.u32 (!%p192_p9), %s1274_s11, 4  ;;  %s1215_s12 = int_to_ptr.vmem [resolvable:$false] %s1214_s12 }
  0x14   : > { %1007 = vmatprep.subr.bf16.mxu0 (!%p192_p9), %v1106_v2  ;;  %1048 = vmatpush3.bf16.msra.mxu1 (!%p192_p9), %v1107_v3  ;;  %s1216_s13 = scalar_lea.vmem (!%p192_p9), %s1215_s12, 4096  ;;  %p1217_p0 = scmp.lt.s32.totalorder (!%p192_p9), %s1543_s6, %s1215_s12 }
  0x15   : > { %s1603_s7 = smov (!%p220_p10, %s925_s7), 31  ;;  %1041 = vmatprep.subr.bf16.mxu1 %v1108_v12  ;;  %p1212_p12 = pnand %p1211_p11, %p1345_p5 }
  0x16   : > { %s926_s14 = sshll.u32 %s1603_s7, 2  ;;  %p1218_p1 = scmp.lt.s32.totalorder %s1216_s13, %s1210_s10 }
  0x17   : > { %s223_s17 = scalar_lea.vmem %s1590_s0, %s926_s14  ;;  %p1213_p13 = pneg %p1212_p12 }
  0x18   : > { %v1098_v4 = vld [vmem:[%s223_s17] sm:$0xff]   ;;  %v1099_v5 = vld [vmem:[%s223_s17 + $0x8] sm:$0xff]   ;;  %v1100_v6 = vld [vmem:[%s223_s17 + $0x10] sm:$0xff]   ;;  %1049 = vmatpush3.bf16.msra.mxu1 %v1108_v12  ;;  %p1219_p2 = por %p1218_p1, %p1217_p0 }
  0x19   : > { %991 = vmatprep.mubr.msk.bf16.mxu0 %vm306_vm0, %v1098_v4  ;;  %v1101_v7 = vld [vmem:[%s223_s17 + $0x18] sm:$0xff]   ;;  %v1102_v8 = vld [vmem:[%s223_s17 + $0x20] sm:$0xff]   ;;  %v1103_v9 = vld [vmem:[%s223_s17 + $0x28] sm:$0xff]   ;;  %1042 = vmatprep.subr.bf16.mxu1 %v1109_v13 }
  0x1a   : > { %992 = vmatmul.mubr.msk.bf16.vlgmr.msra.gmra.mrb[0].mxu0 %vm306_vm0, %v1099_v5  ;;  %v1104_v10 = vld [vmem:[%s223_s17 + $0x30] sm:$0xff]   ;;  %v1105_v11 = vld [vmem:[%s223_s17 + $0x38] sm:$0xff]   ;;  %p1220_p3 = pnand %p1219_p2, %p1213_p13 }
  0x1b   : > { %995 = vmatprep.mubr.msk.bf16.mxu0 %vm306_vm0, %v1100_v6  ;;  %1008 = vmatpush3.bf16.msra.mxu0 %v1106_v2 }
  0x1c   : > { %1009 = vmatprep.subr.bf16.mxu0 %v1107_v3  ;;  %1050 = vmatpush3.bf16.msra.mxu1 %v1109_v13 }
  0x1d   : > { %1043 = vmatprep.subr.bf16.mxu1 %v1110_v14 }
  0x1f   : > { %1010 = vmatpush3.bf16.msra.mxu0 %v1107_v3 }
  0x20   : > { %1011 = vmatprep.subr.bf16.mxu0 %v1108_v12  ;;  %1051 = vmatpush3.bf16.msra.mxu1 %v1110_v14 }
  0x21   : > { %1044 = vmatprep.subr.bf16.mxu1 %v1111_v15 }
  0x22   : > { %996 = vmatmul.mubr.msk.bf16.gmra.mrb[4].mxu0 %vm306_vm0, %v1101_v7 }
  0x23   : > { %999 = vmatprep.mubr.msk.bf16.mxu0 %vm306_vm0, %v1102_v8  ;;  %1012 = vmatpush3.bf16.msra.mxu0 %v1108_v12 }
  0x24   : > { %1013 = vmatprep.subr.bf16.mxu0 %v1109_v13  ;;  %1052 = vmatpush3.bf16.msra.mxu1 %v1111_v15 }
  0x25   : > { %1045 = vmatprep.subr.bf16.mxu1 %v1112_v16 }
  0x27   : > { %1014 = vmatpush3.bf16.msra.mxu0 %v1109_v13 }
  0x28   : > { %1015 = vmatprep.subr.bf16.mxu0 %v1110_v14  ;;  %1053 = vmatpush3.bf16.msra.mxu1 %v1112_v16 }
  0x29   : > { %1046 = vmatprep.subr.bf16.mxu1 %v1113_v17 }
  0x2a   : > { %1000 = vmatmul.mubr.msk.bf16.gmra.mrb[8].mxu0 %vm306_vm0, %v1103_v9 }
  0x2b   : > { %1003 = vmatprep.mubr.msk.bf16.mxu0 %vm306_vm0, %v1104_v10  ;;  %1016 = vmatpush3.bf16.msra.mxu0 %v1110_v14 }
  0x2c   : > { %1017 = vmatprep.subr.bf16.mxu0 %v1111_v15  ;;  %1054 = vmatpush3.bf16.msra.mxu1 %v1113_v17 }
  0x2f   : > { %1018 = vmatpush3.bf16.msra.mxu0 %v1111_v15 }
  0x30   : > { %1019 = vmatprep.subr.bf16.mxu0 %v1112_v16 }
  0x32   : > { %1004 = vmatmul.mubr.msk.bf16.gmra.mrb[12].mxu0 %vm306_vm0, %v1105_v11 }
  0x33   : > { %1020 = vmatpush3.bf16.msra.mxu0 %v1112_v16 }
  0x34   : > { %1021 = vmatprep.subr.bf16.mxu0 %v1113_v17 }
  0x37   : > { %1022 = vmatpush3.bf16.msra.mxu0 %v1113_v17 }
  0xed   : > { %v993_v19 = vpop.f32.mrb[0].mxu0 }
  0xee   : > { %v374_v20 = vadd.f32 %v993_v19, %v1400_v18  ;;  %v365_v21 = vpop.f32.mrb[1].mxu0 }
  0xef   : > { %v366_v22 = vadd.f32 %v1400_v18, %v365_v21  ;;  %v994_v23 = vpop.f32.mrb[2].mxu0 }
  0xf0   : > { %v430_v24 = vmul.f32 0.5, %v374_v20  ;;  %v377_v25 = vadd.f32 %v994_v23, %v1400_v18  ;;  %v368_v26 = vpop.f32.mrb[3].mxu0 }
  0xf1   : > { %v428_v27 = vmul.f32 0.5, %v366_v22  ;;  %v369_v28 = vadd.f32 %v1400_v18, %v368_v26 }
  0xf2   : > { %1114 = vtanh.f32 %v430_v24  ;;  %v431_v29 = vmul.f32 0.5, %v377_v25 }
  0xf3   : > { %1116 = vtanh.f32 %v428_v27  ;;  %v429_v30 = vmul.f32 0.5, %v369_v28 }
  0xf4   : > { %1118 = vtanh.f32 %v431_v29 }
  0xf5   : > { %1120 = vtanh.f32 %v429_v30  ;;  %v997_v31 = vpop.f32.mrb[4].mxu0 }
  0xf6   : > { %v390_v32 = vadd.f32 %v997_v31, %v1400_v18  ;;  %v381_v33 = vpop.f32.mrb[5].mxu0 }
  0xf7   : > { %v382_v34 = vadd.f32 %v1400_v18, %v381_v33  ;;  %v998_v35 = vpop.f32.mrb[6].mxu0 }
  0xf8   : > { %v434_v36 = vmul.f32 0.5, %v390_v32  ;;  %v393_v37 = vadd.f32 %v998_v35, %v1400_v18  ;;  %v384_v38 = vpop.f32.mrb[7].mxu0 }
  0xf9   : > { %v432_v39 = vmul.f32 0.5, %v382_v34  ;;  %v385_v40 = vadd.f32 %v1400_v18, %v384_v38 }
  0xfa   : > { %1122 = vtanh.f32 %v434_v36  ;;  %v435_v41 = vmul.f32 0.5, %v393_v37 }
  0xfb   : > { %1124 = vtanh.f32 %v432_v39  ;;  %v433_v42 = vmul.f32 0.5, %v385_v40 }
  0xfc   : > { %v1115_v43 = vpop.eup %1114  ;;  %1126 = vtanh.f32 %v435_v41 }
  0xfd   : > { %v1117_v44 = vpop.eup %1116  ;;  %v462_v45 = vmul.f32 0.5, %v1115_v43  ;;  %1128 = vtanh.f32 %v433_v42  ;;  %v1001_v46 = vpop.f32.mrb[8].mxu0 }
  0xfe   : > { %v1119_v47 = vpop.eup %1118  ;;  %v460_v48 = vmul.f32 0.5, %v1117_v44  ;;  %v406_v49 = vadd.f32 %v1001_v46, %v1400_v18  ;;  %v397_v50 = vpop.f32.mrb[9].mxu0 }
  0xff   : > { %v1121_v51 = vpop.eup %1120  ;;  %v463_v52 = vmul.f32 0.5, %v1119_v47  ;;  %v398_v53 = vadd.f32 %v1400_v18, %v397_v50  ;;  %v1002_v54 = vpop.f32.mrb[10].mxu0  ;;  %v478_v59 = vadd.f32 0.5, %v462_v45 }
 0x100   : > { %v461_v55 = vmul.f32 0.5, %v1121_v51  ;;  %v438_v56 = vmul.f32 0.5, %v406_v49  ;;  %v409_v57 = vadd.f32 %v1002_v54, %v1400_v18  ;;  %v400_v58 = vpop.f32.mrb[11].mxu0  ;;  %v476_v63 = vadd.f32 0.5, %v460_v48 }
 0x101   : > { %v479_v60 = vadd.f32 0.5, %v463_v52  ;;  %v436_v61 = vmul.f32 0.5, %v398_v53  ;;  %v401_v62 = vadd.f32 %v1400_v18, %v400_v58 }
 0x102   : > { %v477_v0 = vadd.f32 0.5, %v461_v55  ;;  %1130 = vtanh.f32 %v438_v56  ;;  %v439_v1 = vmul.f32 0.5, %v409_v57 }
 0x103   : > { %v493_v2 = vpack.c.bf16 %v479_v60, %v478_v59  ;;  %1132 = vtanh.f32 %v436_v61  ;;  %v437_v3 = vmul.f32 0.5, %v401_v62  ;;  %v946_v59 = vld [vmem:[%s1594_s4] ss:$0 sm:$0xff] }
 0x104   : > { %v1123_v4 = vpop.eup %1122  ;;  %1134 = vtanh.f32 %v439_v1  ;;  %v492_v5 = vpack.c.bf16 %v477_v0, %v476_v63 }
 0x105   : > { %v1125_v6 = vpop.eup %1124  ;;  %v466_v7 = vmul.f32 0.5, %v1123_v4  ;;  %1136 = vtanh.f32 %v437_v3  ;;  %v1005_v8 = vpop.f32.mrb[12].mxu0 }
 0x106   : > { %v1127_v9 = vpop.eup %1126  ;;  %v422_v10 = vadd.f32 %v1005_v8, %v1400_v18  ;;  %v413_v11 = vpop.f32.mrb[13].mxu0  ;;  %1023 = vmatprep.mubr.bf16.mxu0 %v492_v5  ;;  %v464_v12 = vmul.f32 0.5, %v1125_v6 }
 0x107   : > { %v1129_v13 = vpop.eup %1128  ;;  %v482_v14 = vadd.f32 0.5, %v466_v7  ;;  %v467_v15 = vmul.f32 0.5, %v1127_v9  ;;  %v414_v16 = vadd.f32 %v1400_v18, %v413_v11  ;;  %v1006_v17 = vpop.f32.mrb[14].mxu0  ;;  %1024 = vmatmul.mubr.bf16.vlgmr.msra.gmra.mrb[16].mxu0 %v493_v2 }
 0x108   : > { %v442_v19 = vmul.f32 0.5, %v422_v10  ;;  %v425_v20 = vadd.f32 %v1006_v17, %v1400_v18  ;;  %v416_v21 = vpop.f32.mrb[15].mxu0  ;;  %v465_v22 = vmul.f32 0.5, %v1129_v13  ;;  %v480_v27 = vadd.f32 0.5, %v464_v12 }
 0x109   : > { %v483_v23 = vadd.f32 0.5, %v467_v15  ;;  %v440_v24 = vmul.f32 0.5, %v414_v16  ;;  %v417_v25 = vadd.f32 %v1400_v18, %v416_v21 }
 0x10a   : > { %1138 = vtanh.f32 %v442_v19  ;;  %v443_v26 = vmul.f32 0.5, %v425_v20  ;;  %v481_v28 = vadd.f32 0.5, %v465_v22 }
 0x10b   : > { %1140 = vtanh.f32 %v440_v24  ;;  %v441_v29 = vmul.f32 0.5, %v417_v25  ;;  %v495_v30 = vpack.c.bf16 %v483_v23, %v482_v14 }
 0x10c   : > { %v1131_v31 = vpop.eup %1130  ;;  %1142 = vtanh.f32 %v443_v26  ;;  %v494_v32 = vpack.c.bf16 %v481_v28, %v480_v27 }
 0x10d   : > { %v1133_v33 = vpop.eup %1132  ;;  %v470_v34 = vmul.f32 0.5, %v1131_v31  ;;  %1144 = vtanh.f32 %v441_v29 }
 0x10e   : > { %v1135_v35 = vpop.eup %1134  ;;  %v468_v36 = vmul.f32 0.5, %v1133_v33  ;;  %1027 = vmatprep.mubr.bf16.mxu1 %v494_v32 }
 0x10f   : > { %v1137_v37 = vpop.eup %1136  ;;  %v486_v38 = vadd.f32 0.5, %v470_v34  ;;  %v471_v39 = vmul.f32 0.5, %v1135_v35  ;;  %1028 = vmatmul.mubr.bf16.vlgmr.msra.gmra.mrb[0].mxu1 %v495_v30 }
 0x110   : > { %v469_v18 = vmul.f32 0.5, %v1137_v37  ;;  %v484_v41 = vadd.f32 0.5, %v468_v36 }
 0x111   : > { %v487_v40 = vadd.f32 0.5, %v471_v39 }
 0x112   : > { %v485_v42 = vadd.f32 0.5, %v469_v18 }
 0x113   : > { %v497_v43 = vpack.c.bf16 %v487_v40, %v486_v38 }
 0x114   : > { %v1139_v44 = vpop.eup %1138  ;;  %v496_v45 = vpack.c.bf16 %v485_v42, %v484_v41 }
 0x115   : > { %v1141_v46 = vpop.eup %1140  ;;  %v474_v47 = vmul.f32 0.5, %v1139_v44 }
 0x116   : > { %v1143_v48 = vpop.eup %1142  ;;  %v472_v49 = vmul.f32 0.5, %v1141_v46  ;;  %1031 = vmatprep.mubr.bf16.mxu1 %v496_v45 }
 0x117   : > { %v1145_v50 = vpop.eup %1144  ;;  %v490_v51 = vadd.f32 0.5, %v474_v47  ;;  %v475_v52 = vmul.f32 0.5, %v1143_v48  ;;  %1032 = vmatmul.mubr.bf16.gmra.mrb[4].mxu1 %v497_v43 }
 0x118   : > { %v473_v53 = vmul.f32 0.5, %v1145_v50  ;;  %v488_v55 = vadd.f32 0.5, %v472_v49 }
 0x119   : > { %v491_v54 = vadd.f32 0.5, %v475_v52 }
 0x11a   : > { %v489_v56 = vadd.f32 0.5, %v473_v53 }
 0x11b   : > { %v499_v57 = vpack.c.bf16 %v491_v54, %v490_v51 }
 0x11c   : > { %v498_v58 = vpack.c.bf16 %v489_v56, %v488_v55 }
 0x11e   : > { %1035 = vmatprep.mubr.bf16.mxu1 %v498_v58 }
 0x11f   : > { %1036 = vmatmul.mubr.bf16.gmra.mrb[8].mxu1 %v499_v57 }
 0x1da   : > { %v1025_v60 = vpop.f32.mrb[16].mxu0 }
 0x1db   : > { %v614_v61 = vadd.f32 %v1025_v60, %v946_v59  ;;  %v605_v62 = vpop.f32.mrb[17].mxu0 }
 0x1dc   : > { %v606_v63 = vadd.f32 %v946_v59, %v605_v62  ;;  %v1026_v0 = vpop.f32.mrb[18].mxu0 }
 0x1dd   : > { %672 = vmax.xlane.f32.xlu1 %v614_v61  ;;  %v608_v1 = vpop.f32.mrb[19].mxu0  ;;  %v617_v2 = vadd.f32 %v1026_v0, %v946_v59 }
 0x1de   : > { %668 = vmax.xlane.f32.xlu0 %v606_v63  ;;  %v609_v3 = vadd.f32 %v946_v59, %v608_v1 }
 0x1e1   : > { %674 = vmax.xlane.f32.xlu1 %v617_v2 }
 0x1e2   : > { %v1029_v4 = vpop.f32.mrb[0].mxu1  ;;  %670 = vmax.xlane.f32.xlu0 %v609_v3 }
 0x1e3   : > { %v630_v5 = vadd.f32 %v1029_v4, %v946_v59  ;;  %v621_v6 = vpop.f32.mrb[1].mxu1 }
 0x1e4   : > { %v1030_v7 = vpop.f32.mrb[2].mxu1  ;;  %v622_v10 = vadd.f32 %v946_v59, %v621_v6 }
 0x1e5   : > { %v633_v8 = vadd.f32 %v1030_v7, %v946_v59  ;;  %v624_v9 = vpop.f32.mrb[3].mxu1 }
 0x1e6   : > { %680 = vmax.xlane.f32.xlu0 %v630_v5  ;;  %v625_v11 = vadd.f32 %v946_v59, %v624_v9 }
 0x1e7   : > { %682 = vmax.xlane.f32.xlu1 %v633_v8 }
 0x1ea   : > { %v1033_v12 = vpop.f32.mrb[4].mxu1  ;;  %676 = vmax.xlane.f32.xlu0 %v622_v10 }
 0x1eb   : > { %v1421_v13 = vadd.f32 %v1033_v12, %v946_v59  ;;  %v637_v14 = vpop.f32.mrb[5].mxu1  ;;  %678 = vmax.xlane.f32.xlu1 %v625_v11 }
 0x1ec   : > { %v1034_v15 = vpop.f32.mrb[6].mxu1  ;;  %v1427_v19 = vadd.f32 %v946_v59, %v637_v14 }
 0x1ed   : > { %v1423_v16 = vadd.f32 %v1034_v15, %v946_v59  ;;  %v640_v17 = vpop.f32.mrb[7].mxu1 }
 0x1ee   : > { %688 = vmax.xlane.f32.xlu0 %v1421_v13  ;;  %v1429_v20 = vadd.f32 %v946_v59, %v640_v17 }
 0x1ef   : > { %690 = vmax.xlane.f32.xlu1 %v1423_v16 }
 0x1f2   : > { %v1037_v21 = vpop.f32.mrb[8].mxu1  ;;  %684 = vmax.xlane.f32.xlu0 %v1427_v19 }
 0x1f3   : > { %v653_v22 = vpop.f32.mrb[9].mxu1  ;;  %686 = vmax.xlane.f32.xlu1 %v1429_v20  ;;  %v1438_v27 = vadd.f32 %v1037_v21, %v946_v59 }
 0x1f4   : > { %v1433_v23 = vadd.f32 %v946_v59, %v653_v22  ;;  %v1038_v24 = vpop.f32.mrb[10].mxu1 }
 0x1f5   : > { %v656_v25 = vpop.f32.mrb[11].mxu1  ;;  %v1441_v28 = vadd.f32 %v1038_v24, %v946_v59 }
 0x1f6   : > { %v1435_v26 = vadd.f32 %v946_v59, %v656_v25  ;;  %692 = vmax.xlane.f32.xlu0 %v1433_v23 }
 0x1f8   : > { %694 = vmax.xlane.f32.xlu1 %v1435_v26 }
 0x1fa   : > { %696 = vmax.xlane.f32.xlu0 %v1438_v27 }
 0x1fc   : > { %698 = vmax.xlane.f32.xlu1 %v1441_v28 }
 0x26a   : > { %v673_v29 = vpop.xlane.xlu1 %672 }
 0x26b   : > { %v702_v30 = vsub.f32 %v614_v61, %v673_v29  ;;  %v669_v31 = vpop.xlane.xlu0 %668 }
 0x26c   : > { %v700_v32 = vsub.f32 %v606_v63, %v669_v31 }
 0x26d   : > { %v720_v33 = vmul.f32 1.442695, %v702_v30 }
 0x26e   : > { %v716_v34 = vmul.f32 1.442695, %v700_v32  ;;  %v675_v35 = vpop.xlane.xlu1 %674 }
 0x26f   : > { %1146 = vpow2.f32 %v720_v33  ;;  %v703_v36 = vsub.f32 %v617_v2, %v675_v35  ;;  %v671_v37 = vpop.xlane.xlu0 %670 }
 0x270   : > { %v701_v38 = vsub.f32 %v609_v3, %v671_v37  ;;  %1148 = vpow2.f32 %v716_v34 }
 0x271   : > { %v722_v39 = vmul.f32 1.442695, %v703_v36 }
 0x272   : > { %v718_v18 = vmul.f32 1.442695, %v701_v38 }
 0x273   : > { %1150 = vpow2.f32 %v722_v39  ;;  %v681_v40 = vpop.xlane.xlu0 %680 }
 0x274   : > { %v706_v41 = vsub.f32 %v630_v5, %v681_v40  ;;  %v683_v42 = vpop.xlane.xlu1 %682  ;;  %1152 = vpow2.f32 %v718_v18 }
 0x275   : > { %v707_v43 = vsub.f32 %v633_v8, %v683_v42 }
 0x276   : > { %v728_v44 = vmul.f32 1.442695, %v706_v41 }
 0x277   : > { %v730_v45 = vmul.f32 1.442695, %v707_v43  ;;  %v677_v46 = vpop.xlane.xlu0 %676 }
 0x278   : > { %1154 = vpow2.f32 %v728_v44  ;;  %v704_v47 = vsub.f32 %v622_v10, %v677_v46  ;;  %v679_v48 = vpop.xlane.xlu1 %678 }
 0x279   : > { %v1445_v49 = vpop.eup %1146  ;;  %v705_v50 = vsub.f32 %v625_v11, %v679_v48  ;;  %1156 = vpow2.f32 %v730_v45 }
 0x27a   : > { %v724_v51 = vmul.f32 1.442695, %v704_v47  ;;  %752 = vadd.xlane.f32.xlu0 %v1445_v49  ;;  %v1448_v54 = vpop.eup %1148 }
 0x27b   : > { %v726_v52 = vmul.f32 1.442695, %v705_v50  ;;  %v689_v53 = vpop.xlane.xlu0 %688 }
 0x27c   : > { %1158 = vpow2.f32 %v724_v51  ;;  %v710_v55 = vsub.f32 %v1421_v13, %v689_v53  ;;  %v691_v56 = vpop.xlane.xlu1 %690 }
 0x27d   : > { %v1451_v57 = vpop.eup %1150  ;;  %v711_v58 = vsub.f32 %v1423_v16, %v691_v56  ;;  %1160 = vpow2.f32 %v726_v52 }
 0x27e   : > { %v736_v59 = vmul.f32 1.442695, %v710_v55  ;;  %754 = vadd.xlane.f32.xlu1 %v1451_v57  ;;  %748 = vadd.xlane.f32.xlu0 %v1448_v54  ;;  %v1457_v0 = vpop.eup %1152 }
 0x27f   : > { %v738_v60 = vmul.f32 1.442695, %v711_v58  ;;  %v685_v61 = vpop.xlane.xlu0 %684 }
 0x280   : > { %1162 = vpow2.f32 %v736_v59  ;;  %v708_v62 = vsub.f32 %v1427_v19, %v685_v61  ;;  %v687_v63 = vpop.xlane.xlu1 %686 }
 0x281   : > { %v709_v1 = vsub.f32 %v1429_v20, %v687_v63  ;;  %1164 = vpow2.f32 %v738_v60 }
 0x282   : > { %v1460_v2 = vpop.eup %1154  ;;  %v732_v3 = vmul.f32 1.442695, %v708_v62  ;;  %750 = vadd.xlane.f32.xlu1 %v1457_v0 }
 0x283   : > { %v734_v4 = vmul.f32 1.442695, %v709_v1  ;;  %760 = vadd.xlane.f32.xlu0 %v1460_v2  ;;  %v693_v5 = vpop.xlane.xlu0 %692  ;;  %v1465_v7 = vpop.eup %1156 }
 0x284   : > { %1166 = vpow2.f32 %v732_v3  ;;  %v712_v6 = vsub.f32 %v1433_v23, %v693_v5 }
 0x285   : > { %v695_v8 = vpop.xlane.xlu1 %694  ;;  %1168 = vpow2.f32 %v734_v4 }
 0x286   : > { %v1467_v9 = vpop.eup %1158  ;;  %v740_v10 = vmul.f32 1.442695, %v712_v6  ;;  %v713_v11 = vsub.f32 %v1435_v26, %v695_v8  ;;  %762 = vadd.xlane.f32.xlu1 %v1465_v7 }
 0x287   : > { %756 = vadd.xlane.f32.xlu0 %v1467_v9  ;;  %v697_v12 = vpop.xlane.xlu0 %696  ;;  %v1473_v15 = vpop.eup %1160 }
 0x288   : > { %1170 = vpow2.f32 %v740_v10  ;;  %v742_v13 = vmul.f32 1.442695, %v713_v11  ;;  %v714_v14 = vsub.f32 %v1438_v27, %v697_v12 }
 0x289   : > { %v699_v16 = vpop.xlane.xlu1 %698 }
 0x28a   : > { %v1475_v17 = vpop.eup %1162  ;;  %1172 = vpow2.f32 %v742_v13  ;;  %v744_v19 = vmul.f32 1.442695, %v714_v14  ;;  %v715_v20 = vsub.f32 %v1441_v28, %v699_v16  ;;  %758 = vadd.xlane.f32.xlu1 %v1473_v15 }
 0x28b   : > { %768 = vadd.xlane.f32.xlu0 %v1475_v17  ;;  %v1480_v22 = vpop.eup %1164 }
 0x28c   : > { %1174 = vpow2.f32 %v744_v19  ;;  %v746_v21 = vmul.f32 1.442695, %v715_v20 }
 0x28e   : > { %v1482_v23 = vpop.eup %1166  ;;  %1176 = vpow2.f32 %v746_v21  ;;  %770 = vadd.xlane.f32.xlu1 %v1480_v22 }
 0x28f   : > { %764 = vadd.xlane.f32.xlu0 %v1482_v23  ;;  %v1486_v24 = vpop.eup %1168 }
 0x292   : > { %v1488_v25 = vpop.eup %1170  ;;  %766 = vadd.xlane.f32.xlu1 %v1486_v24 }
 0x293   : > { %772 = vadd.xlane.f32.xlu0 %v1488_v25 }
 0x294   : > { %v1492_v26 = vpop.eup %1172 }
 0x296   : > { %v1494_v27 = vpop.eup %1174  ;;  %774 = vadd.xlane.f32.xlu1 %v1492_v26 }
 0x297   : > { %776 = vadd.xlane.f32.xlu0 %v1494_v27 }
 0x298   : > { %v1498_v28 = vpop.eup %1176 }
 0x29a   : > { %778 = vadd.xlane.f32.xlu1 %v1498_v28 }
 0x307   : > { %v753_v29 = vpop.xlane.xlu0 %752 }
 0x308   : > { %1178 = vrcp.f32 %v753_v29 }
 0x30b   : > { %v755_v30 = vpop.xlane.xlu1 %754  ;;  %v749_v31 = vpop.xlane.xlu0 %748 }
 0x30c   : > { %1180 = vrcp.f32 %v755_v30 }
 0x30d   : > { %1182 = vrcp.f32 %v749_v31 }
 0x30f   : > { %v751_v32 = vpop.xlane.xlu1 %750 }
 0x310   : > { %1184 = vrcp.f32 %v751_v32  ;;  %v761_v33 = vpop.xlane.xlu0 %760 }
 0x311   : > { %1186 = vrcp.f32 %v761_v33 }
 0x312   : > { %v1179_v34 = vpop.eup %1178 }
 0x313   : > { %v814_v35 = vmul.f32 %v1179_v34, %v1445_v49  ;;  %v763_v36 = vpop.xlane.xlu1 %762 }
 0x314   : > { %1188 = vrcp.f32 %v763_v36  ;;  %v757_v37 = vpop.xlane.xlu0 %756 }
 0x315   : > { %830 = vst [vmem:[%s1505_s26 + $0x10] sm:$0xff] %v814_v35  ;;  %1190 = vrcp.f32 %v757_v37 }
 0x316   : > { %v1181_v38 = vpop.eup %1180 }
 0x317   : > { %v1183_v39 = vpop.eup %1182  ;;  %v815_v18 = vmul.f32 %v1181_v38, %v1451_v57  ;;  %v759_v40 = vpop.xlane.xlu1 %758 }
 0x318   : > { %v812_v41 = vmul.f32 %v1183_v39, %v1448_v54  ;;  %1192 = vrcp.f32 %v759_v40  ;;  %v769_v42 = vpop.xlane.xlu0 %768 }
 0x319   : > { %831 = vst [vmem:[%s1505_s26 + $0x18] sm:$0xff] %v815_v18  ;;  %1194 = vrcp.f32 %v769_v42 }
 0x31a   : > { %v1185_v43 = vpop.eup %1184  ;;  %828 = vst [vmem:[%s1505_s26] sm:$0xff] %v812_v41 }
 0x31b   : > { %v1187_v44 = vpop.eup %1186  ;;  %v813_v45 = vmul.f32 %v1185_v43, %v1457_v0  ;;  %v771_v46 = vpop.xlane.xlu1 %770 }
 0x31c   : > { %v818_v47 = vmul.f32 %v1187_v44, %v1460_v2  ;;  %1196 = vrcp.f32 %v771_v46  ;;  %v765_v48 = vpop.xlane.xlu0 %764 }
 0x31d   : > { %829 = vst [vmem:[%s1505_s26 + $0x8] sm:$0xff] %v813_v45  ;;  %1198 = vrcp.f32 %v765_v48 }
 0x31e   : > { %v1189_v49 = vpop.eup %1188  ;;  %834 = vst [vmem:[%s1505_s26 + $0x30] sm:$0xff] %v818_v47 }
 0x31f   : > { %v1191_v50 = vpop.eup %1190  ;;  %v819_v51 = vmul.f32 %v1189_v49, %v1465_v7  ;;  %v767_v52 = vpop.xlane.xlu1 %766 }
 0x320   : > { %v816_v53 = vmul.f32 %v1191_v50, %v1467_v9  ;;  %1200 = vrcp.f32 %v767_v52  ;;  %v773_v54 = vpop.xlane.xlu0 %772 }
 0x321   : > { %835 = vst [vmem:[%s1505_s26 + $0x38] sm:$0xff] %v819_v51  ;;  %1202 = vrcp.f32 %v773_v54 }
 0x322   : > { %v1193_v55 = vpop.eup %1192  ;;  %832 = vst [vmem:[%s1505_s26 + $0x20] sm:$0xff] %v816_v53 }
 0x323   : > { %v1195_v56 = vpop.eup %1194  ;;  %v817_v57 = vmul.f32 %v1193_v55, %v1473_v15  ;;  %v775_v58 = vpop.xlane.xlu1 %774 }
 0x324   : > { %v822_v59 = vmul.f32 %v1195_v56, %v1475_v17  ;;  %1204 = vrcp.f32 %v775_v58  ;;  %v777_v60 = vpop.xlane.xlu0 %776 }
 0x325   : > { %833 = vst [vmem:[%s1505_s26 + $0x28] sm:$0xff] %v817_v57  ;;  %1206 = vrcp.f32 %v777_v60 }
 0x326   : > { %v1197_v61 = vpop.eup %1196  ;;  %838 = vst [vmem:[%s1505_s26 + $0x50] sm:$0xff] %v822_v59 }
 0x327   : > { %v1199_v62 = vpop.eup %1198  ;;  %v823_v63 = vmul.f32 %v1197_v61, %v1480_v22  ;;  %v779_v0 = vpop.xlane.xlu1 %778 }
 0x328   : > { %v820_v1 = vmul.f32 %v1199_v62, %v1482_v23  ;;  %1208 = vrcp.f32 %v779_v0 }
 0x329   : > { %839 = vst [vmem:[%s1505_s26 + $0x58] sm:$0xff] %v823_v63 }
 0x32a   : > { %v1201_v2 = vpop.eup %1200  ;;  %836 = vst [vmem:[%s1505_s26 + $0x40] sm:$0xff] %v820_v1 }
 0x32b   : > { %v1203_v3 = vpop.eup %1202  ;;  %v821_v4 = vmul.f32 %v1201_v2, %v1486_v24 }
 0x32c   : > { %v824_v5 = vmul.f32 %v1203_v3, %v1488_v25 }
 0x32d   : > { %837 = vst [vmem:[%s1505_s26 + $0x48] sm:$0xff] %v821_v4 }
 0x32e   : > { %v1205_v6 = vpop.eup %1204  ;;  %840 = vst [vmem:[%s1505_s26 + $0x60] sm:$0xff] %v824_v5 }
 0x32f   : > { %v1207_v7 = vpop.eup %1206  ;;  %v825_v8 = vmul.f32 %v1205_v6, %v1492_v26 }
 0x330   : > { %v826_v9 = vmul.f32 %v1207_v7, %v1494_v27 }
 0x331   : > { %841 = vst [vmem:[%s1505_s26 + $0x68] sm:$0xff] %v825_v8 }
 0x332   : > { %v1209_v10 = vpop.eup %1208  ;;  %842 = vst [vmem:[%s1505_s26 + $0x70] sm:$0xff] %v826_v9 }
 0x333   : > { %v827_v11 = vmul.f32 %v1209_v10, %v1498_v28 }
 0x335   : > { %843 = vst [vmem:[%s1505_s26 + $0x78] sm:$0xff] %v827_v11 }
 0x336   : > { %1223 = shalt.err (!%p1220_p3)
}
 0x337   : > { %s1224_s14 = scalar_lea.hbm %s1541_s9, 2048  ;;  %s1228_s17 = scalar_lea.hbm %s1595_s5, 4096 }
 0x338   : > { %p1225_p4 = scmp.ne.s32.totalorder %s1541_s9, %s1224_s14  ;;  %p1229_p9 = scmp.lt.u32.totalorder %s1541_s9, %s1595_s5 }
 0x339   : > { %p1230_p10 = scmp.lt.u32.totalorder %s1228_s17, %s1224_s14  ;;  %p1232_p12 = scmp.lt.u32.totalorder %s1224_s14, %s1541_s9 }
 0x33a   : > { %p1226_p7 = pnand %p1225_p4, %p1345_p5 }
 0x33b   : > { %p1231_p11 = por %p1230_p10, %p1229_p9 }
 0x33c   : > { %p1227_p8 = pneg %p1226_p7 }
 0x33d   : > { %p1233_p13 = por %p1232_p12, %p1231_p11 }
 0x33f   : > { %p1234_p0 = pnand %p1233_p13, %p1227_p8 }
 0x341   : > { %1237 = shalt.err (!%p1234_p0)
}
 0x342   : > { %s1275_s26 = smov 128   ;;  %s1276_s30 = smov 8  }
 0x343   : > { %1055 = dma.vmem_to_hbm [thread:$0]  (%p1345_p5), %s1543_s6, 2048, %s1541_s9, %s1549_s22, %s1275_s26, %s1275_s26, %s1276_s30  }
 0x344 PF: > { %p1061_p1 = scmp.ge.s32.totalorder %s1272_s21, 2  ;;  %s873_s7 = sand.u32 1, %s1260_s18  }
 0x345   : > { %s874_s8 = scalar_lea.sflag [#allocation3], %s873_s7 }
 0x346   : > { %p1058_p2 = pnand %p1061_p1, %p1349_p6 }
 0x348   : > { %1255 = dma.done.wait (!%p1058_p2), %s874_s8, 2048  }
 0x349   : > { %1257 = vsyncadd (!%p1058_p2), %s874_s8, 4294965248  ;;  %p15_p3 = scmp.ge.s32.totalorder %s1332_s24, 4   ;;  %s1598_s18 = smov %s1264_s19 }
 0x34a   : > { %s1599_s19 = smov %s1268_s20  ;;  %s1600_s20 = smov %s1343_s27 }
 0x34b   : > { %s1601_s21 = smov %s1332_s24  ;;  %17 = sbr.rel (!%p15_p3) target bundleno = 3 (0x3), region = 75 }
 0x352   :  { %879 = vsyncpa [#allocation3], 1 }
 0x353   :  { %881 = vsyncpa [#allocation3 + $0x1], 1 }

</bundles_post_ra>
